<compile_context>
chip_gen: v7x
topology: tpu7x:2x2x1
jax: 0.10.0
libtpu: 0.0.40
codegen_flags: <defaults>
</compile_context>

<pallas_src>
import functools
import math

import jax
import jax.numpy as jnp
import numpy as np
from jax import lax
from jax.experimental import pallas as pl
from jax.experimental.pallas import tpu as pltpu


def _round_up(x, m):
    return -(-x // m) * m


# ----------------------------- projection kernel --------------------------- #

def _proj_kernel(x_ref, wp_ref, bp_ref, dst_ref, src_ref, *, two_o):
    # One wide matmul: [TM, I] @ [I, 4*O] (4*O = 128 lanes here).
    y = (jnp.dot(x_ref[...], wp_ref[...], preferred_element_type=jnp.float32)
         + bp_ref[...])
    dst_ref[...] = y[:, :two_o]          # [ q * 1/sqrt(in_feats) | FFN ]
    src_ref[...] = y[:, two_o:]          # [ k | v ]


def pallas_qkvf_proj(x99, wp, bp, o_head, *, block_rows=None):
    """x99: [N, I_total]; wp: [I_total, 4*o_head] (column order q|ffn|k|v, q cols
    pre-scaled); bp: [1, 4*o_head].  Returns (dst_pack, src_pack), each
    [N, 2*o_head], from a single fused kernel (x99 read once, two write streams)."""
    n, i_total = x99.shape
    four_o = wp.shape[1]
    two_o = 2 * o_head
    assert n % 8 == 0, "caller pads N to a multiple of 8"
    if block_rows is None:
        block_rows = min(512, n)
    if n % block_rows:
        block_rows = math.gcd(n, 512)

    cost = pl.CostEstimate(
        flops=2 * n * i_total * four_o,
        transcendentals=0,
        bytes_accessed=4 * (n * i_total + i_total * four_o + four_o + n * four_o))
    out_sds = jax.ShapeDtypeStruct((n, two_o), jnp.float32)
    kernel = functools.partial(_proj_kernel, two_o=two_o)
    return pl.pallas_call(
        kernel,
        out_shape=(out_sds, out_sds),
        grid=(n // block_rows,),
        in_specs=[pl.BlockSpec((block_rows, i_total), lambda m: (m, 0)),
                  pl.BlockSpec((i_total, four_o), lambda m: (0, 0)),
                  pl.BlockSpec((1, four_o), lambda m: (0, 0))],
        out_specs=(pl.BlockSpec((block_rows, two_o), lambda m: (m, 0)),
                   pl.BlockSpec((block_rows, two_o), lambda m: (m, 0))),
        compiler_params=pltpu.CompilerParams(dimension_semantics=("parallel",)),
        cost_estimate=cost,
    )(x99, wp, bp)


# ------------------------------ attention kernel --------------------------- #

def _attn_out_kernel(dst_ref, src_ref, feat_ref, w3t_ref, b3_ref, gamma_ref,
                     beta_ref, out_ref, wv_acc, z_acc, *,
                     num_head, head_dim, use_bf16_scores):
    js = pl.program_id(2)
    hd = num_head * head_dim

    @pl.when(js == 0)
    def _init():
        wv_acc[...] = jnp.zeros_like(wv_acc)
        z_acc[...] = jnp.zeros_like(z_acc)

    q = dst_ref[:, :hd]                      # [T_dst, H*D] (1/sqrt(in_feats) folded)
    k = src_ref[:, :hd]                      # [T_src, H*D]
    v = src_ref[:, hd:]                      # [T_src, H*D]

    # Single f32 edge stream: value = 'connect' edge feature, NaN = "no edge".
    feat_raw = feat_ref[0]                                   # [T_dst, T_src]
    is_edge = jnp.logical_not(jnp.isnan(feat_raw))           # hoisted, once per step
    feat = jnp.where(is_edge, feat_raw, 0.0)                 # NaN-free for exp chain

    # Ones column folded into v so z = sum_src p comes out of the same MXU matmul
    # (no XLU cross-lane reduce, no per-step broadcast).
    v_aug = jnp.concatenate(
        [v, jnp.ones((v.shape[0], 1), jnp.float32)], axis=1)  # [T_src, H*D + 1]
    if use_bf16_scores:        # v6e/v7x compute lever; relaxes the fp32 match
        feat = feat.astype(jnp.bfloat16)
        v_aug = v_aug.astype(jnp.bfloat16)

    for h in range(num_head):                 # static unroll over heads (small)
        lo, hi = h * head_dim, (h + 1) * head_dim
        # S[dst, src] = sum_d q[dst, d] * k[src, d]   (per head)
        s = lax.dot_general(q[:, lo:hi], k[:, lo:hi],
                            (((1,), (1,)), ((), ())),
                            preferred_element_type=jnp.float32)  # [T_dst, T_src]
        if use_bf16_scores:
            s = s.astype(jnp.bfloat16)
        e = jnp.exp(jnp.clip(s * feat, -5.0, 5.0))
        p = jnp.where(is_edge, e, jnp.zeros_like(e))           # exact 0 off-edge
        wvz = jnp.dot(p, v_aug, preferred_element_type=jnp.float32)  # [T_dst, H*D+1]
        wv_acc[:, lo:hi] += wvz[:, lo:hi]                      # this head's wv
        z_acc[:, h:h + 1] += wvz[:, hd:hd + 1]                 # this head's row-sum

    @pl.when(js == pl.num_programs(2) - 1)
    def _finalize():
        # exact divide, once per dst tile (finalize only)
        wv = jnp.concatenate(
            [wv_acc[:, h * head_dim:(h + 1) * head_dim] / (z_acc[:, h:h + 1] + 1.0)
             for h in range(num_head)], axis=1)                # [T_dst, H*D]
        # single output projection, K = H*D
        o = (jnp.dot(wv, w3t_ref[...], preferred_element_type=jnp.float32)
             + b3_ref[...])                                    # [T_dst, O]
        h_out = dst_ref[:, hd:] + o                            # aggr_FFN(x99) + o
        mean = jnp.mean(h_out, axis=-1, keepdims=True)
        var = jnp.mean((h_out - mean) ** 2, axis=-1, keepdims=True)
        ln = (h_out - mean) / jnp.sqrt(var + 1e-5) * gamma_ref[...] + beta_ref[...]
        out_ref[0] = h_out + ln


def pallas_attn_out(dst_pack, src_pack, masked_feats, w3t, b3, gamma, beta,
                    num_head, *, t_dst, t_src, use_bf16_scores=False):
    """dst_pack/src_pack: [N_pad, 2*H*D]; masked_feats: [nv, N_pad, N_pad] f32 with
    NaN on missing edges.  Flash-style accumulation over src tiles; grid =
    (nv, dst tiles, src tiles) with src ("arbitrary") last; nv/dst "parallel"."""
    n_pad, two_hd = dst_pack.shape
    hd = two_hd // 2
    head_dim = hd // num_head
    nv = masked_feats.shape[0]
    o_out = w3t.shape[1]
    assert n_pad % t_dst == 0 and n_pad % t_src == 0

    # VMEM budget (double-buffered inputs + output + scratch); the edge-feat tile
    # dominates.  (512, 2048) -> ~10 MiB, well inside v7x's 64 MiB physical VMEM.
    vmem_bytes = (
        2 * t_dst * t_src * 4                 # edge-feat tile, double-buffered
        + 2 * (t_dst + t_src) * two_hd * 4    # dst/src node tiles
        + 2 * t_dst * o_out * 4               # output tile
        + 2 * (hd * o_out + 3 * o_out) * 4    # out-proj weights / bias / LN params
        + t_dst * (hd + num_head) * 4)        # accumulator scratch
    vmem_limit = min(2 * vmem_bytes + (16 << 20), 128 << 20)

    cost = pl.CostEstimate(
        flops=nv * n_pad * n_pad * num_head * (4 * head_dim + 8),
        transcendentals=nv * n_pad * n_pad * num_head,
        bytes_accessed=4 * (nv * n_pad * n_pad + nv * n_pad * o_out
                            + 2 * n_pad * two_hd))

    kernel = functools.partial(_attn_out_kernel, num_head=num_head,
                               head_dim=head_dim, use_bf16_scores=use_bf16_scores)
    return pl.pallas_call(
        kernel,
        out_shape=jax.ShapeDtypeStruct((nv, n_pad, o_out), jnp.float32),
        grid=(nv, n_pad // t_dst, n_pad // t_src),
        in_specs=[
            pl.BlockSpec((t_dst, two_hd), lambda i, jd, js: (jd, 0)),   # [q|ffn]
            pl.BlockSpec((t_src, two_hd), lambda i, jd, js: (js, 0)),   # [k|v]
            pl.BlockSpec((1, t_dst, t_src), lambda i, jd, js: (i, jd, js)),  # edges
            pl.BlockSpec((hd, o_out), lambda i, jd, js: (0, 0)),        # W_o^T
            pl.BlockSpec((1, o_out), lambda i, jd, js: (0, 0)),         # b_o
            pl.BlockSpec((1, o_out), lambda i, jd, js: (0, 0)),         # LN gamma
            pl.BlockSpec((1, o_out), lambda i, jd, js: (0, 0)),         # LN beta
        ],
        out_specs=pl.BlockSpec((1, t_dst, o_out), lambda i, jd, js: (i, jd, 0)),
        scratch_shapes=[pltpu.VMEM((t_dst, hd), jnp.float32),        # wv accumulator
                        pltpu.VMEM((t_dst, num_head), jnp.float32)], # z accumulator
        compiler_params=pltpu.CompilerParams(
            dimension_semantics=("parallel", "parallel", "arbitrary"),
            vmem_limit_bytes=vmem_limit),
        cost_estimate=cost,
    )(dst_pack, src_pack, masked_feats, w3t, b3, gamma, beta)


# ------------------------------ model wrapper ------------------------------ #

def init_params(key, in_feats, o_feats, num_head, num_vids):
    o_head = o_feats * num_head
    aggr_in = in_feats * num_vids
    ks = jax.random.split(key, 10)

    def lin(k, fan_in, fan_out):
        k1, k2 = jax.random.split(k)
        bound = 1.0 / math.sqrt(fan_in)
        w = jax.random.uniform(k1, (fan_out, fan_in), jnp.float32, -bound, bound)
        b = jax.random.uniform(k2, (fan_out,), jnp.float32, -bound, bound)
        return w, b

    # Only the parameters that influence the returned value (aggr_* branch).
    return {
        "aggr_q": lin(ks[0], aggr_in, o_head),
        "aggr_k": lin(ks[1], aggr_in, o_head),
        "aggr_v": lin(ks[2], aggr_in, o_head),
        "aggr_o": lin(ks[3], o_head, o_head),
        "aggr_ffn": lin(ks[4], aggr_in, o_head),
        "aggr_ln_gamma": jnp.ones((o_head,), jnp.float32),   # nn.LayerNorm default
        "aggr_ln_beta": jnp.zeros((o_head,), jnp.float32),
    }


def pack_params(params, in_feats):
    """One-time pre-pack: fused + transposed projection weights grouped by consumer
    ([q|ffn] -> dst stream, [k|v] -> src stream), 1/sqrt(in_feats) folded into the
    q columns, plus the transposed output projection / LN params."""
    scale = 1.0 / math.sqrt(in_feats)
    w_q, b_q = params["aggr_q"]
    w_k, b_k = params["aggr_k"]
    w_v, b_v = params["aggr_v"]
    w_f, b_f = params["aggr_ffn"]
    w_o, b_o = params["aggr_o"]
    o_head = w_q.shape[0]
    wp = jnp.concatenate([w_q.T * scale, w_f.T, w_k.T, w_v.T], axis=1)   # [I, 4*O]
    bp = jnp.concatenate([b_q * scale, b_f, b_k, b_v]).reshape(1, 4 * o_head)
    return {
        "wp": wp, "bp": bp,
        "w3t": w_o.T,                                 # [H*D, O]
        "b3": b_o.reshape(1, o_head),
        "gamma": params["aggr_ln_gamma"].reshape(1, o_head),
        "beta": params["aggr_ln_beta"].reshape(1, o_head),
    }


def make_masked_feats(feats, masks):
    """Single dense f32 edge stream: per-edge 'connect' feature where an edge exists,
    NaN where it does not (out-of-band sentinel: a genuine 0-valued edge feature is
    NOT silently masked).  Built once per graph."""
    return jnp.where(masks > 0, feats, np.nan).astype(jnp.float32)


def _choose_tiles(n, t_dst=None, t_src=None):
    """Big src tiles (review: 2048) amortize the ~0.35 us per-grid-step overhead;
    t_dst is capped at 512 so the 'parallel' grid extent nv*N/t_dst stays >= 2 on
    2-TensorCore chips (v7x) at realistic N.  Returns (n_padded, t_dst, t_src)."""
    if t_dst is None and t_src is None:
        if n <= 512:
            t = _round_up(n, 8)
            return t, t, t
        if n <= 2048:
            n_pad = _round_up(n, 512)
            return n_pad, 512, n_pad
        n_pad = _round_up(n, 2048)
        return n_pad, 512, 2048
    if t_dst is None:
        t_dst = min(512, _round_up(n, 8))
    if t_src is None:
        t_src = t_dst
    big, small = max(t_dst, t_src), min(t_dst, t_src)
    assert big % small == 0, "explicit t_dst / t_src must divide each other"
    return _round_up(n, big), t_dst, t_src


def transformer_layer_conn(packed, x_dict, masked_feats, v_id_list, num_head, *,
                           t_dst=None, t_src=None, use_bf16_scores=False):
    o_head = packed["w3t"].shape[1]
    # x_dict[-1] in the reference; consumed as the aggregated x_dict[99] features.
    x99 = jnp.concatenate([x_dict[vid] for vid in v_id_list], axis=1)   # [N, I_total]
    n = x99.shape[0]
    n_pad, td, ts = _choose_tiles(n, t_dst, t_src)
    if n_pad != n:
        pad = n_pad - n
        x99 = jnp.pad(x99, ((0, pad), (0, 0)))
        # padded rows/cols carry NaN ("no edge"): contribute exactly 0, sliced off.
        masked_feats = jnp.pad(masked_feats, ((0, 0), (0, pad), (0, pad)),
                               constant_values=np.nan)
    dst_pack, src_pack = pallas_qkvf_proj(x99, packed["wp"], packed["bp"], o_head)
    out = pallas_attn_out(dst_pack, src_pack, masked_feats,
                          packed["w3t"], packed["b3"], packed["gamma"],
                          packed["beta"], num_head,
                          t_dst=td, t_src=ts, use_bf16_scores=use_bf16_scores)
    out = out[:, :n, :]                                                 # [nv, N, O]
    return {vid: out[i] for i, vid in enumerate(v_id_list)}


# --------------------------- pure-JAX reference ---------------------------- #

def reference_forward(params, x_dict, masks, feats, v_id_list,
                      in_feats, o_feats, num_head):
    o_head = o_feats * num_head
    prec = "highest"
    x99 = jnp.concatenate([x_dict[vid] for vid in v_id_list], axis=1)
    N = x99.shape[0]

    def lin(x, wb):
        w, b = wb
        return jnp.dot(x, w.T, precision=prec) + b

    q = lin(x99, params["aggr_q"]).reshape(N, num_head, o_feats)
    k = lin(x99, params["aggr_k"]).reshape(N, num_head, o_feats)
    v = lin(x99, params["aggr_v"]).reshape(N, num_head, o_feats)
    ffn = lin(x99, params["aggr_ffn"])
    w3, b3 = params["aggr_o"]
    gamma = params["aggr_ln_gamma"]
    beta = params["aggr_ln_beta"]

    out = {}
    for i, v_id in enumerate(v_id_list):
        s = jnp.einsum("nhd,mhd->nmh", q, k, precision=prec)      # dst n, src m
        s = s * feats[i][:, :, None]
        s = jnp.exp(jnp.clip(s / math.sqrt(in_feats), -5.0, 5.0))
        s = s * masks[i][:, :, None]
        wv = jnp.einsum("nmh,mhd->nhd", s, v, precision=prec)
        z = jnp.sum(s, axis=1)                                    # [N, H]
        wv = wv / (z[:, :, None] + 1.0)
        o = jnp.dot(wv.reshape(N, o_head), w3.T, precision=prec) + b3
        h = ffn + o
        mean = jnp.mean(h, axis=-1, keepdims=True)
        var = jnp.mean((h - mean) ** 2, axis=-1, keepdims=True)
        ln = (h - mean) / jnp.sqrt(var + 1e-5) * gamma + beta
        out[v_id] = h + ln
    return out


# ----------------------------------- main ----------------------------------- #

if __name__ == "__main__":
    in_feats, o_feats, num_head = 16, 8, 4
    v_id_list = [0, 1]
    N = 16
    o_head = o_feats * num_head

    key = jax.random.PRNGKey(0)
    k_par, k_x0, k_x1, k_m, k_f = jax.random.split(key, 5)

    params = init_params(k_par, in_feats, o_feats, num_head, len(v_id_list))
    packed = pack_params(params, in_feats)

    x_dict = {
        0: jax.random.normal(k_x0, (N, in_feats), jnp.float32),
        1: jax.random.normal(k_x1, (N, in_feats), jnp.float32),
    }
    # Dense stand-in for the DGL 'connect_{v_id}' edge sets + per-edge feat[:, 0].
    masks = jax.random.bernoulli(k_m, 0.5, (len(v_id_list), N, N)).astype(jnp.float32)
    feats = jax.random.uniform(k_f, (len(v_id_list), N, N), jnp.float32)
    masked_feats = make_masked_feats(feats, masks)   # single f32 edge stream

    out = transformer_layer_conn(packed, x_dict, masked_feats, v_id_list, num_head)
    out = {k2: jax.block_until_ready(v2) for k2, v2 in out.items()}

    ref = reference_forward(params, x_dict, masks, feats, v_id_list,
                            in_feats, o_feats, num_head)
    for v_id in v_id_list:
        assert out[v_id].shape == (N, o_head), out[v_id].shape
        assert bool(jnp.all(jnp.isfinite(out[v_id])))
        # Typical agreement is <= 1e-4; the extra slack only covers possible MXU
        # f32 pass-count differences between the Mosaic (Pallas) and XLA matmul
        # lowerings.  Any structural bug produces O(0.1-1) errors.
        assert jnp.allclose(out[v_id], ref[v_id], atol=1e-2, rtol=1e-2), (
            float(jnp.max(jnp.abs(out[v_id] - ref[v_id]))))

    print("KERNEL_OK")
</pallas_src>

<mosaic_0001>
module attributes {stable_mosaic.version = 11 : i64} {
  func.func @_proj_kernel(%arg0: i32, %arg1: memref<16x32xf32, #tpu.memory_space<vmem>>, %arg2: memref<32x128xf32, #tpu.memory_space<vmem>>, %arg3: memref<1x128xf32, #tpu.memory_space<vmem>>, %arg4: memref<16x64xf32, #tpu.memory_space<vmem>>, %arg5: memref<16x64xf32, #tpu.memory_space<vmem>>) attributes {dimension_semantics = [#tpu.dimension_semantics<parallel>], iteration_bounds = array<i64: 1>, scalar_prefetch = 0 : i64, scratch_operands = 0 : i64, tpu.core_type = #tpu.core_type<tc>, window_params = [{transform_indices = @transform_0, window_bounds = array<i64: 16, 32>}, {pipeline_mode = #tpu.pipeline_mode<synchronous>, transform_indices = @transform_1, window_bounds = array<i64: 32, 128>}, {pipeline_mode = #tpu.pipeline_mode<synchronous>, transform_indices = @transform_2, window_bounds = array<i64: 1, 128>}, {transform_indices = @transform_3, window_bounds = array<i64: 16, 64>}, {transform_indices = @transform_4, window_bounds = array<i64: 16, 64>}]} {
    %c0 = arith.constant 0 : index
    %c0_0 = arith.constant 0 : index
    %0 = vector.load %arg1[%c0, %c0_0] : memref<16x32xf32, #tpu.memory_space<vmem>>, vector<16x32xf32>
    %c0_1 = arith.constant 0 : index
    %c0_2 = arith.constant 0 : index
    %1 = vector.load %arg2[%c0_1, %c0_2] : memref<32x128xf32, #tpu.memory_space<vmem>>, vector<32x128xf32>
    %cst = arith.constant dense<0.000000e+00> : vector<16x128xf32>
    %2 = tpu.matmul %0, %1, %cst {dimension_numbers = #tpu.dot_dimension_numbers<[1], [0], [0], [1], [0, 0, 1, 1], [], []>} : vector<16x32xf32>, vector<32x128xf32>, vector<16x128xf32> -> vector<16x128xf32>
    %c0_3 = arith.constant 0 : index
    %c0_4 = arith.constant 0 : index
    %3 = vector.load %arg3[%c0_3, %c0_4] : memref<1x128xf32, #tpu.memory_space<vmem>>, vector<1x128xf32>
    %4 = vector.broadcast %3 : vector<1x128xf32> to vector<16x128xf32>
    %5 = arith.addf %2, %4 : vector<16x128xf32>
    %6 = vector.extract_strided_slice %5 {offsets = [0, 0], sizes = [16, 64], strides = [1, 1]} : vector<16x128xf32> to vector<16x64xf32>
    %c0_5 = arith.constant 0 : index
    %c0_6 = arith.constant 0 : index
    %7 = vector.load %arg4[%c0_5, %c0_6] : memref<16x64xf32, #tpu.memory_space<vmem>>, vector<16x64xf32>
    tpu.vector_store %arg4[%c0_5, %c0_6], %6 {strides = array<i32>} : memref<16x64xf32, #tpu.memory_space<vmem>>, vector<16x64xf32>,
    %8 = vector.extract_strided_slice %5 {offsets = [0, 64], sizes = [16, 64], strides = [1, 1]} : vector<16x128xf32> to vector<16x64xf32>
    %c0_7 = arith.constant 0 : index
    %c0_8 = arith.constant 0 : index
    %9 = vector.load %arg5[%c0_7, %c0_8] : memref<16x64xf32, #tpu.memory_space<vmem>>, vector<16x64xf32>
    tpu.vector_store %arg5[%c0_7, %c0_8], %8 {strides = array<i32>} : memref<16x64xf32, #tpu.memory_space<vmem>>, vector<16x64xf32>,
    return
  }
  func.func @transform_0(%arg0: i32) -> (i32, i32) {
    %c0_i32 = arith.constant 0 : i32
    %c0_i32_0 = arith.constant 0 : i32
    return %arg0, %c0_i32 : i32, i32
  }
  func.func @transform_1(%arg0: i32) -> (i32, i32) {
    %c0_i32 = arith.constant 0 : i32
    %c0_i32_0 = arith.constant 0 : i32
    %c0_i32_1 = arith.constant 0 : i32
    return %c0_i32, %c0_i32_0 : i32, i32
  }
  func.func @transform_2(%arg0: i32) -> (i32, i32) {
    %c0_i32 = arith.constant 0 : i32
    %c0_i32_0 = arith.constant 0 : i32
    %c0_i32_1 = arith.constant 0 : i32
    return %c0_i32, %c0_i32_0 : i32, i32
  }
  func.func @transform_3(%arg0: i32) -> (i32, i32) {
    %c0_i32 = arith.constant 0 : i32
    %c0_i32_0 = arith.constant 0 : i32
    return %arg0, %c0_i32 : i32, i32
  }
  func.func @transform_4(%arg0: i32) -> (i32, i32) {
    %c0_i32 = arith.constant 0 : i32
    %c0_i32_0 = arith.constant 0 : i32
    return %arg0, %c0_i32 : i32, i32
  }
}

</mosaic_0001>

<bundles_post_ra>
// kernel: tpu_custom_call.1
= control target key start
LH: loop header
LB: loop body
LE: loop exit
PB: predicated region body
PF: predicated region fallthrough
CT: control target
= control target key end

     0   :  { %10 = vsyncpa [#allocation3], 0  ;;  %s418_s0 = inlined_call_operand.hbm [shape: f32[16,32], index: 0, kind: input, shape index: {}]   ;;  %s419_s1 = inlined_call_operand.hbm [shape: f32[32,128], index: 1, kind: input, shape index: {}]   ;;  %s420_s2 = inlined_call_operand.vmem [shape: f32[1,128], index: 2, kind: input, shape index: {}]   ;;  %s421_s3 = inlined_call_operand.hbm [shape: f32[16,64], index: 3, kind: output, shape index: {0}]   ;;  %s422_s4 = inlined_call_operand.hbm [shape: f32[16,64], index: 4, kind: output, shape index: {1}]  }
   0x1   :  { %11 = vsyncpa [#allocation6], 0 }
   0x2   :  { %12 = vsyncpa [#allocation4], 0 }
   0x3   :  { %13 = vsyncpa [#allocation9], 0  ;;  %s319_s15 = smov [#allocation2]   ;;  %s223_s19 = scalar_lea.hbm %s418_s0, 256 }
   0x4   :  { %s19_s16 = sshll.u32 %s319_s15, 4  ;;  %p224_p0 = scmp.ne.s32.totalorder %s418_s0, %s223_s19  ;;  %s20_s16 = int_to_ptr.vmem [resolvable:$true] %s19_s16 }
   0x5   :  { %p227_p1 = scmp.lt.u32.totalorder %s223_s19, %s418_s0 }
   0x7   :  { %p229_p2 = pnand %p227_p1, %p224_p0 }
   0x9   :  { %232 = shalt.err (!%p229_p2)
}
   0xa   :  { %s233_s24 = scalar_lea.vmem %s20_s16, 256  ;;  %p238_p4 = scmp.lt.s32.totalorder %s20_s16, %s20_s16 }
   0xb   :  { %p234_p3 = scmp.ne.s32.totalorder %s20_s16, %s233_s24  ;;  %p239_p5 = scmp.lt.s32.totalorder %s233_s24, %s233_s24 }
   0xd   :  { %p240_p6 = por %p239_p5, %p238_p4 }
   0xf   :  { %p241_p7 = pnand %p240_p6, %p234_p3 }
  0x11   :  { %244 = shalt.err (!%p241_p7)
}
  0x12   :  { %s320_s25 = smov 128   ;;  %s321_s26 = smov 8  }
  0x13   :  { %25 = dma.hbm_to_vmem [thread:$0]  %s418_s0, 256, %s20_s16, [#allocation3], %s320_s25, %s320_s25, %s321_s26  }
  0x14   :  { %s322_s29 = smov [#allocation5]   ;;  %s245_s7 = scalar_lea.hbm %s419_s1, 512 }
  0x15   :  { %s31_s30 = sshll.u32 %s322_s29, 4  ;;  %p246_p8 = scmp.ne.s32.totalorder %s419_s1, %s245_s7  ;;  %s32_s30 = int_to_ptr.vmem [resolvable:$true] %s31_s30 }
  0x16   :  { %p249_p9 = scmp.lt.u32.totalorder %s245_s7, %s419_s1 }
  0x18   :  { %p251_p10 = pnand %p249_p9, %p246_p8 }
  0x1a   :  { %254 = shalt.err (!%p251_p10)
}
  0x1b   :  { %s255_s12 = scalar_lea.vmem %s32_s30, 512  ;;  %p260_p12 = scmp.lt.s32.totalorder %s32_s30, %s32_s30 }
  0x1c   :  { %p256_p11 = scmp.ne.s32.totalorder %s32_s30, %s255_s12  ;;  %p261_p13 = scmp.lt.s32.totalorder %s255_s12, %s255_s12 }
  0x1e   :  { %p262_p0 = por %p261_p13, %p260_p12 }
  0x20   :  { %p263_p1 = pnand %p262_p0, %p256_p11 }
  0x22   :  { %266 = shalt.err (!%p263_p1)
}
  0x23   :  { %37 = dma.hbm_to_vmem [thread:$0]  %s419_s1, 512, %s32_s30, [#allocation6], %s320_s25, %s320_s25, %s321_s26  }
  0x24   :  { %311 = dma.done.wait [#allocation3], 256  }
  0x25   :  { %312 = vsyncadd [#allocation3], 4294967040 }
  0x26   :  { %313 = dma.done.wait [#allocation6], 512  }
  0x27   :  { %314 = vsyncadd [#allocation6], 4294966784  ;;  %vm59_vm0 = vcmask 261120   ;;  %v48_v0 = vld [vmem:[#allocation5] sm:$0xff]  ;;  %v49_v1 = vld [vmem:[#allocation5 + $0x8] sm:$0xff]  ;;  %s323_s15 = smov [#allocation7]  }
  0x28   :  { %v50_v2 = vld [vmem:[#allocation5 + $0x10] sm:$0xff]  ;;  %v208_v3 = vpack.c.bf16 %v49_v1, %v48_v0  ;;  %v51_v4 = vld [vmem:[#allocation5 + $0x18] sm:$0xff]  ;;  %s159_s16 = sshll.u32 %s323_s15, 4  ;;  %vm141_vm1 = vcmask 523264   ;;  %s324_s17 = smov 64   ;;  %s160_s16 = int_to_ptr.vmem [resolvable:$true] %s159_s16 }
  0x29   :  { %v46_v5 = vld [vmem:[#allocation2] sm:$0xff]  ;;  %v212_v6 = vpack.c.bf16 %v51_v4, %v50_v2  ;;  %v47_v7 = vld [vmem:[#allocation2 + $0x8] sm:$0xff]  ;;  %s267_s18 = scalar_lea.vmem %s160_s16, 256  ;;  %p272_p3 = scmp.lt.s32.totalorder %s160_s16, %s160_s16 }
  0x2a   :  { %205 = vmatprep.mubr.msk.f32.mxu0 %vm59_vm0, %v46_v5  ;;  %209 = vmatprep.subr.bf16.mxu0 %v208_v3  ;;  %v188_v8 = vld [vmem:[%s420_s2] ss:$0 sm:$0xff]  ;;  %p268_p2 = scmp.ne.s32.totalorder %s160_s16, %s267_s18  ;;  %p273_p4 = scmp.lt.s32.totalorder %s267_s18, %s267_s18 }
  0x2b   :  { %211 = vmatpush3.bf16.msra.mxu0 %v208_v3 }
  0x2c   :  { %213 = vmatprep.subr.bf16.mxu0 %v212_v6  ;;  %p274_p5 = por %p273_p4, %p272_p3 }
  0x2e   :  { %p275_p6 = pnand %p274_p5, %p268_p2 }
  0x2f   :  { %215 = vmatpush3.bf16.msra.mxu0 %v212_v6 }
  0x32   :  { %206 = vmatmul.mubr.msk.f32.vlgmr.msra.gmra.mrb[0].mxu0 %vm59_vm0, %v47_v7 }
 0x105   :  { %v207_v9 = vpop.f32.mrb[0].mxu0 }
 0x106   :  { %v138_v10 = vadd.f32 %v207_v9, %v188_v8  ;;  %v132_v11 = vpop.f32.mrb[1].mxu0 }
 0x107   :  { %v133_v12 = vadd.f32 %v188_v8, %v132_v11 }
 0x108   :  { %143 = vst.msk [vmem:[#allocation7 + $0x8] sm:$0xff] %vm141_vm1, %v138_v10 }
 0x109   :  { %146 = vrot.lane.b32.xlu0 %v133_v12, %s324_s17  ;;  %142 = vst.msk [vmem:[#allocation7] sm:$0xff] %vm141_vm1, %v133_v12 }
 0x10a   :  { %278 = shalt.err (!%p275_p6)
}
 0x10b   :  { %s279_s20 = scalar_lea.hbm %s421_s3, 256 }
 0x10c   :  { %p280_p7 = scmp.ne.s32.totalorder %s421_s3, %s279_s20  ;;  %p283_p8 = scmp.lt.u32.totalorder %s279_s20, %s421_s3 }
 0x10e   :  { %p285_p9 = pnand %p283_p8, %p280_p7 }
 0x110   :  { %288 = shalt.err (!%p285_p9)
}
 0x111   :  { %165 = dma.vmem_to_hbm [thread:$0]  %s160_s16, 256, %s421_s3, [#allocation4], %s320_s25, %s320_s25, %s321_s26  }
 0x112   :  { %148 = vrot.lane.b32.xlu0 %v138_v10, %s324_s17  ;;  %s325_s29 = smov [#allocation8]  }
 0x113   :  { %s171_s30 = sshll.u32 %s325_s29, 4  ;;  %s172_s30 = int_to_ptr.vmem [resolvable:$true] %s171_s30 }
 0x114   :  { %s289_s5 = scalar_lea.vmem %s172_s30, 256  ;;  %p294_p11 = scmp.lt.s32.totalorder %s172_s30, %s172_s30 }
 0x115   :  { %p290_p10 = scmp.ne.s32.totalorder %s172_s30, %s289_s5  ;;  %p295_p12 = scmp.lt.s32.totalorder %s289_s5, %s289_s5 }
 0x117   :  { %p296_p13 = por %p295_p12, %p294_p11 }
 0x119   :  { %p297_p0 = pnand %p296_p13, %p290_p10 }
 0x17b   :  { %v147_v13 = vpop.permute.xlu0 %146 }
 0x17c   :  { %152 = vst.msk [vmem:[#allocation8] sm:$0xff] %vm141_vm1, %v147_v13 }
 0x184   :  { %v149_v14 = vpop.permute.xlu0 %148 }
 0x185   :  { %153 = vst.msk [vmem:[#allocation8 + $0x8] sm:$0xff] %vm141_vm1, %v149_v14 }
 0x186   :  { %300 = shalt.err (!%p297_p0)
}
 0x187   :  { %s301_s3 = scalar_lea.hbm %s422_s4, 256 }
 0x188   :  { %p302_p1 = scmp.ne.s32.totalorder %s422_s4, %s301_s3  ;;  %p305_p2 = scmp.lt.u32.totalorder %s301_s3, %s422_s4 }
 0x18a   :  { %p307_p3 = pnand %p305_p2, %p302_p1 }
 0x18c   :  { %310 = shalt.err (!%p307_p3)
}
 0x18d   :  { %177 = dma.vmem_to_hbm [thread:$0]  %s172_s30, 256, %s422_s4, [#allocation9], %s320_s25, %s320_s25, %s321_s26  }
 0x18e   :  { %315 = dma.done.wait [#allocation4], 256  }
 0x18f   :  { %316 = vsyncadd [#allocation4], 4294967040 }
 0x190   :  { %317 = dma.done.wait [#allocation9], 256  }
 0x191   :  { %318 = vsyncadd [#allocation9], 4294967040 }
 0x192   :  { %184 = vsyncpa [#allocation3], 1 }
 0x193   :  { %185 = vsyncpa [#allocation6], 1 }
 0x194   :  { %186 = vsyncpa [#allocation4], 1 }
 0x195   :  { %187 = vsyncpa [#allocation9], 1 }

</bundles_post_ra>
